<compile_context>
chip_gen: v7x
topology: tpu7x:2x2x1
jax: 0.10.0
libtpu: 0.0.40
codegen_flags: <defaults>
</compile_context>

<pallas_src>
import functools

import jax
import jax.numpy as jnp
from jax.experimental import pallas as pl
from jax.experimental.pallas import tpu as pltpu

INPUT_CH = 4
GEO_FEAT_DIM = 15
IN_DIM = INPUT_CH + GEO_FEAT_DIM   # 19
HIDDEN_DIM = 64
OUT_DIM = 3

_SELU_ALPHA = 1.6732632423543772
_SELU_SCALE = 1.0507009873554805


def _round_up(x, m):
    return ((x + m - 1) // m) * m


def _color_mlp_kernel(x_ref, w0_ref, w1_ref, w2_ref, o_ref):
    # Fully fused 3-layer MLP on one row tile.
    x = x_ref[...]                                        # (tile_n, 19)

    h = jnp.dot(x, w0_ref[...],
                preferred_element_type=jnp.float32)       # (tile_n, 64)
    # Swish: h * sigmoid(h)  (sigmoid -> EUP, keeps VALU slots free)
    h = h * jax.nn.sigmoid(h)

    h = jnp.dot(h, w1_ref[...],
                preferred_element_type=jnp.float32)       # (tile_n, 64)
    # SELU: scale * (x if x > 0 else alpha * (exp(x) - 1))
    h = _SELU_SCALE * jnp.where(h > 0, h, _SELU_ALPHA * (jnp.exp(h) - 1.0))

    out = jnp.dot(h, w2_ref[...],
                  preferred_element_type=jnp.float32)     # (tile_n, 3)
    o_ref[...] = out.astype(o_ref.dtype)


@functools.partial(jax.jit, static_argnames=("tile_n",))
def color_net_forward(x, w0, w1, w2, *, tile_n=1024):
    """x: (N, 19) f32; w0: (19, 64); w1: (64, 64); w2: (64, 3). Returns (N, 3)."""
    n, c = x.shape
    assert c == IN_DIM, f"expected last dim {IN_DIM}, got {c}"

    # Single grid step for small batches; otherwise tile_n rows per step.
    # Keep the row tile a multiple of 8 (sublane alignment).
    tile = _round_up(min(tile_n, n), 8)
    n_pad = _round_up(n, tile)
    if n_pad != n:
        # Padded rows are computed independently and sliced off below.
        x = jnp.pad(x, ((0, n_pad - n), (0, 0)))

    out = pl.pallas_call(
        _color_mlp_kernel,
        out_shape=jax.ShapeDtypeStruct((n_pad, OUT_DIM), x.dtype),
        grid_spec=pltpu.PrefetchScalarGridSpec(
            num_scalar_prefetch=0,
            grid=(n_pad // tile,),
            in_specs=[
                pl.BlockSpec((tile, IN_DIM), lambda i: (i, 0)),
                # Weights: constant index_map -> fetched once, held resident.
                pl.BlockSpec((IN_DIM, HIDDEN_DIM), lambda i: (0, 0)),
                pl.BlockSpec((HIDDEN_DIM, HIDDEN_DIM), lambda i: (0, 0)),
                pl.BlockSpec((HIDDEN_DIM, OUT_DIM), lambda i: (0, 0)),
            ],
            out_specs=pl.BlockSpec((tile, OUT_DIM), lambda i: (i, 0)),
        ),
        compiler_params=pltpu.CompilerParams(
            dimension_semantics=("parallel",)),
    )(x, w0, w1, w2)

    return out[:n]


def init_params(key):
    """Deterministic parameter init (nn.Linear default, stored transposed (in, out))."""
    k0, k1, k2 = jax.random.split(key, 3)
    b0 = 1.0 / jnp.sqrt(IN_DIM)
    b1 = 1.0 / jnp.sqrt(HIDDEN_DIM)
    w0 = jax.random.uniform(k0, (IN_DIM, HIDDEN_DIM), jnp.float32, -b0, b0)
    w1 = jax.random.uniform(k1, (HIDDEN_DIM, HIDDEN_DIM), jnp.float32, -b1, b1)
    w2 = jax.random.uniform(k2, (HIDDEN_DIM, OUT_DIM), jnp.float32, -b1, b1)
    return w0, w1, w2


def reference_forward(x, w0, w1, w2):
    h = x @ w0
    h = h * jax.nn.sigmoid(h)                 # Swish
    h = h @ w1
    h = jax.nn.selu(h)                        # SELU
    return h @ w2


if __name__ == "__main__":
    key = jax.random.PRNGKey(0)
    kx, kp = jax.random.split(key)

    N = 256  # number of sample points (input_feat rows)
    x = jax.random.normal(kx, (N, IN_DIM), jnp.float32)
    w0, w1, w2 = init_params(kp)

    out = jax.block_until_ready(color_net_forward(x, w0, w1, w2))
    ref = reference_forward(x, w0, w1, w2)

    assert out.shape == (N, OUT_DIM), out.shape
    assert jnp.allclose(out, ref, atol=1e-4, rtol=1e-4), "mismatch vs reference"

    # Also exercise a non-multiple-of-tile batch (wrapper pads + slices).
    x2 = jax.random.normal(kx, (100, IN_DIM), jnp.float32)
    out2 = jax.block_until_ready(color_net_forward(x2, w0, w1, w2))
    ref2 = reference_forward(x2, w0, w1, w2)
    assert out2.shape == (100, OUT_DIM)
    assert jnp.allclose(out2, ref2, atol=1e-4, rtol=1e-4), "mismatch (padded path)"

    print("KERNEL_OK")
</pallas_src>

<mosaic_0001>
module attributes {stable_mosaic.version = 11 : i64} {
  func.func @_color_mlp_kernel(%arg0: i32, %arg1: memref<256x19xf32, #tpu.memory_space<vmem>>, %arg2: memref<19x64xf32, #tpu.memory_space<vmem>>, %arg3: memref<64x64xf32, #tpu.memory_space<vmem>>, %arg4: memref<64x3xf32, #tpu.memory_space<vmem>>, %arg5: memref<256x3xf32, #tpu.memory_space<vmem>>) attributes {dimension_semantics = [#tpu.dimension_semantics<parallel>], iteration_bounds = array<i64: 1>, scalar_prefetch = 0 : i64, scratch_operands = 0 : i64, tpu.core_type = #tpu.core_type<tc>, window_params = [{transform_indices = @transform_0, window_bounds = array<i64: 256, 19>}, {pipeline_mode = #tpu.pipeline_mode<synchronous>, transform_indices = @transform_1, window_bounds = array<i64: 19, 64>}, {pipeline_mode = #tpu.pipeline_mode<synchronous>, transform_indices = @transform_2, window_bounds = array<i64: 64, 64>}, {pipeline_mode = #tpu.pipeline_mode<synchronous>, transform_indices = @transform_3, window_bounds = array<i64: 64, 3>}, {transform_indices = @transform_4, window_bounds = array<i64: 256, 3>}]} {
    %c0 = arith.constant 0 : index
    %c0_0 = arith.constant 0 : index
    %0 = vector.load %arg1[%c0, %c0_0] : memref<256x19xf32, #tpu.memory_space<vmem>>, vector<256x19xf32>
    %c0_1 = arith.constant 0 : index
    %c0_2 = arith.constant 0 : index
    %1 = vector.load %arg2[%c0_1, %c0_2] : memref<19x64xf32, #tpu.memory_space<vmem>>, vector<19x64xf32>
    %cst = arith.constant dense<0.000000e+00> : vector<256x64xf32>
    %2 = tpu.matmul %0, %1, %cst {dimension_numbers = #tpu.dot_dimension_numbers<[1], [0], [0], [1], [0, 0, 1, 1], [], []>} : vector<256x19xf32>, vector<19x64xf32>, vector<256x64xf32> -> vector<256x64xf32>
    %3 = arith.negf %2 : vector<256x64xf32>
    %4 = math.exp %3 : vector<256x64xf32>
    %cst_3 = arith.constant 1.000000e+00 : f32
    %5 = vector.broadcast %cst_3 : f32 to vector<256x64xf32>
    %6 = arith.addf %5, %4 : vector<256x64xf32>
    %7 = arith.divf %5, %6 : vector<256x64xf32>
    %8 = arith.mulf %2, %7 : vector<256x64xf32>
    %c0_4 = arith.constant 0 : index
    %c0_5 = arith.constant 0 : index
    %9 = vector.load %arg3[%c0_4, %c0_5] : memref<64x64xf32, #tpu.memory_space<vmem>>, vector<64x64xf32>
    %cst_6 = arith.constant dense<0.000000e+00> : vector<256x64xf32>
    %10 = tpu.matmul %8, %9, %cst_6 {dimension_numbers = #tpu.dot_dimension_numbers<[1], [0], [0], [1], [0, 0, 1, 1], [], []>} : vector<256x64xf32>, vector<64x64xf32>, vector<256x64xf32> -> vector<256x64xf32>
    %cst_7 = arith.constant 0.000000e+00 : f32
    %11 = vector.broadcast %cst_7 : f32 to vector<256x64xf32>
    %12 = arith.cmpf ogt, %10, %11 : vector<256x64xf32>
    %13 = math.exp %10 : vector<256x64xf32>
    %cst_8 = arith.constant 1.000000e+00 : f32
    %14 = vector.broadcast %cst_8 : f32 to vector<256x64xf32>
    %15 = arith.subf %13, %14 : vector<256x64xf32>
    %cst_9 = arith.constant 1.67326319 : f32
    %16 = vector.broadcast %cst_9 : f32 to vector<256x64xf32>
    %17 = arith.mulf %16, %15 : vector<256x64xf32>
    %18 = arith.select %12, %10, %17 : vector<256x64xi1>, vector<256x64xf32>
    %cst_10 = arith.constant 1.05070102 : f32
    %19 = vector.broadcast %cst_10 : f32 to vector<256x64xf32>
    %20 = arith.mulf %19, %18 : vector<256x64xf32>
    %c0_11 = arith.constant 0 : index
    %c0_12 = arith.constant 0 : index
    %21 = vector.load %arg4[%c0_11, %c0_12] : memref<64x3xf32, #tpu.memory_space<vmem>>, vector<64x3xf32>
    %cst_13 = arith.constant dense<0.000000e+00> : vector<256x3xf32>
    %22 = tpu.matmul %20, %21, %cst_13 {dimension_numbers = #tpu.dot_dimension_numbers<[1], [0], [0], [1], [0, 0, 1, 1], [], []>} : vector<256x64xf32>, vector<64x3xf32>, vector<256x3xf32> -> vector<256x3xf32>
    %c0_14 = arith.constant 0 : index
    %c0_15 = arith.constant 0 : index
    %23 = vector.load %arg5[%c0_14, %c0_15] : memref<256x3xf32, #tpu.memory_space<vmem>>, vector<256x3xf32>
    tpu.vector_store %arg5[%c0_14, %c0_15], %22 {strides = array<i32>} : memref<256x3xf32, #tpu.memory_space<vmem>>, vector<256x3xf32>,
    return
  }
  func.func @transform_0(%arg0: i32) -> (i32, i32) {
    %c0_i32 = arith.constant 0 : i32
    %c0_i32_0 = arith.constant 0 : i32
    return %arg0, %c0_i32 : i32, i32
  }
  func.func @transform_1(%arg0: i32) -> (i32, i32) {
    %c0_i32 = arith.constant 0 : i32
    %c0_i32_0 = arith.constant 0 : i32
    %c0_i32_1 = arith.constant 0 : i32
    return %c0_i32, %c0_i32_0 : i32, i32
  }
  func.func @transform_2(%arg0: i32) -> (i32, i32) {
    %c0_i32 = arith.constant 0 : i32
    %c0_i32_0 = arith.constant 0 : i32
    %c0_i32_1 = arith.constant 0 : i32
    return %c0_i32, %c0_i32_0 : i32, i32
  }
  func.func @transform_3(%arg0: i32) -> (i32, i32) {
    %c0_i32 = arith.constant 0 : i32
    %c0_i32_0 = arith.constant 0 : i32
    %c0_i32_1 = arith.constant 0 : i32
    return %c0_i32, %c0_i32_0 : i32, i32
  }
  func.func @transform_4(%arg0: i32) -> (i32, i32) {
    %c0_i32 = arith.constant 0 : i32
    %c0_i32_0 = arith.constant 0 : i32
    return %arg0, %c0_i32 : i32, i32
  }
}

</mosaic_0001>

<bundles_post_ra>
// kernel: color_net_forward.1
= control target key start
LH: loop header
LB: loop body
LE: loop exit
PB: predicated region body
PF: predicated region fallthrough
CT: control target
= control target key end

     0   :  { %vm52_vm0 = vcmask 154624   ;;  %vm149_vm1 = vcmask 1042432   ;;  %vm610_vm2 = vcmask 523264   ;;  %s2812_s1 = inlined_call_operand.vmem [shape: f32[19,64], index: 1, kind: input, shape index: {}]   ;;  %s2813_s0 = inlined_call_operand.vmem [shape: f32[256,19], index: 0, kind: input, shape index: {}]   ;;  %s2814_s2 = inlined_call_operand.vmem [shape: f32[64,64], index: 2, kind: input, shape index: {}]   ;;  %s2815_s3 = inlined_call_operand.vmem [shape: f32[64,3], index: 3, kind: input, shape index: {}]   ;;  %s2816_s4 = inlined_call_operand.vmem [shape: f32[256,3], index: 4, kind: output, shape index: {}]  }
   0x1   :  { %v49_v0 = vld [vmem:[%s2812_s1] sm:$0xff]  ;;  %v50_v1 = vld [vmem:[%s2812_s1 + $0x8] sm:$0xff]  ;;  %v51_v4 = vld [vmem:[%s2812_s1 + $0x10] sm:$0x7] }
   0x2   :  { %v1980_v2 = vpack.c.bf16 %v50_v1, %v49_v0  ;;  %v17_v3 = vld [vmem:[%s2813_s0] sm:$0xff]  ;;  %v18_v6 = vld [vmem:[%s2813_s0 + $0x8] sm:$0xff]  ;;  %v19_v8 = vld [vmem:[%s2813_s0 + $0x10] sm:$0xff] }
   0x3   :  { %1804 = vmatprep.mubr.msk.f32.mxu0 %vm52_vm0, %v17_v3  ;;  %v33_v5 = vld [vmem:[%s2813_s0 + $0x80] sm:$0xff]  ;;  %v34_v7 = vld [vmem:[%s2813_s0 + $0x88] sm:$0xff]  ;;  %v35_v9 = vld [vmem:[%s2813_s0 + $0x90] sm:$0xff] }
   0x4   :  { %1981 = vmatprep.subr.bf16.mxu0 %v1980_v2  ;;  %2016 = vmatprep.subr.bf16.mxu1 %v1980_v2  ;;  %v20_v10 = vld [vmem:[%s2813_s0 + $0x18] sm:$0xff]  ;;  %v21_v12 = vld [vmem:[%s2813_s0 + $0x20] sm:$0xff]  ;;  %v603_v15 = vld [vmem:[%s2814_s2 + $0x8] sm:$0xff] }
   0x5   :  { %1983 = vmatpush3.bf16.msra.mxu0 %v1980_v2  ;;  %2018 = vmatpush3.bf16.msra.mxu1 %v1980_v2  ;;  %v36_v11 = vld [vmem:[%s2813_s0 + $0x98] sm:$0xff]  ;;  %v37_v13 = vld [vmem:[%s2813_s0 + $0xa0] sm:$0xff]  ;;  %v22_v17 = vld [vmem:[%s2813_s0 + $0x28] sm:$0xff] }
   0x6   :  { %1802 = vmatprep.subr.msk.mxu0 %vm149_vm1, %v51_v4  ;;  %2017 = vmatprep.subr.msk.mxu1 %vm149_vm1, %v51_v4  ;;  %v602_v14 = vld [vmem:[%s2814_s2] sm:$0xff]  ;;  %v38_v18 = vld [vmem:[%s2813_s0 + $0xa8] sm:$0xff]  ;;  %v23_v19 = vld [vmem:[%s2813_s0 + $0x30] sm:$0xff] }
   0x7   :  { %1828 = vmatprep.mubr.msk.f32.mxu1 %vm52_vm0, %v33_v5  ;;  %v1984_v16 = vpack.c.bf16 %v603_v15, %v602_v14  ;;  %v39_v20 = vld [vmem:[%s2813_s0 + $0xb0] sm:$0xff]  ;;  %v24_v21 = vld [vmem:[%s2813_s0 + $0x38] sm:$0xff]  ;;  %v25_v23 = vld [vmem:[%s2813_s0 + $0x40] sm:$0xff] }
   0x8   :  { %v40_v22 = vld [vmem:[%s2813_s0 + $0xb8] sm:$0xff]  ;;  %v41_v24 = vld [vmem:[%s2813_s0 + $0xc0] sm:$0xff]  ;;  %v26_v25 = vld [vmem:[%s2813_s0 + $0x48] sm:$0xff] }
   0x9   :  { %1803 = vmatpush3.msk.msra.mxu0 %vm149_vm1, %v51_v4  ;;  %2019 = vmatpush3.msk.msra.mxu1 %vm149_vm1, %v51_v4  ;;  %v42_v26 = vld [vmem:[%s2813_s0 + $0xc8] sm:$0xff]  ;;  %v27_v27 = vld [vmem:[%s2813_s0 + $0x50] sm:$0xff]  ;;  %v28_v29 = vld [vmem:[%s2813_s0 + $0x58] sm:$0xff] }
   0xa   :  { %1805 = vmatmul.mubr.msk.f32.vlgmr.msra.gmra.mrb[0].mxu0 %vm52_vm0, %v18_v6  ;;  %1829 = vmatmul.mubr.msk.f32.vlgmr.msra.gmra.mrb[0].mxu1 %vm52_vm0, %v34_v7  ;;  %v43_v28 = vld [vmem:[%s2813_s0 + $0xd0] sm:$0xff]  ;;  %v44_v30 = vld [vmem:[%s2813_s0 + $0xd8] sm:$0xff]  ;;  %v29_v31 = vld [vmem:[%s2813_s0 + $0x60] sm:$0xff] }
   0xb   :  { %1807 = vmatprep.mubr.msk.f32.mxu0 %vm52_vm0, %v19_v8  ;;  %1831 = vmatprep.mubr.msk.f32.mxu1 %vm52_vm0, %v35_v9  ;;  %v45_v32 = vld [vmem:[%s2813_s0 + $0xe0] sm:$0xff]  ;;  %v30_v33 = vld [vmem:[%s2813_s0 + $0x68] sm:$0xff]  ;;  %v31_v35 = vld [vmem:[%s2813_s0 + $0x70] sm:$0xff] }
   0xc   :  { %1985 = vmatprep.subr.bf16.mxu1 %v1984_v16  ;;  %v46_v34 = vld [vmem:[%s2813_s0 + $0xe8] sm:$0xff]  ;;  %v47_v36 = vld [vmem:[%s2813_s0 + $0xf0] sm:$0xff]  ;;  %v32_v37 = vld [vmem:[%s2813_s0 + $0x78] sm:$0xff] }
   0xd   :  { %1987 = vmatpush3.bf16.msra.mxu1 %v1984_v16  ;;  %v48_v38 = vld [vmem:[%s2813_s0 + $0xf8] sm:$0xff]  ;;  %v604_v39 = vld [vmem:[%s2814_s2 + $0x10] sm:$0xff]  ;;  %v606_v42 = vld [vmem:[%s2814_s2 + $0x20] sm:$0xff] }
   0xe   :  { %1808 = vmatmul.mubr.msk.f32.gmra.mrb[2].mxu0 %vm52_vm0, %v20_v10  ;;  %1832 = vmatmul.mubr.msk.f32.gmra.mrb[2].mxu1 %vm52_vm0, %v36_v11  ;;  %v605_v40 = vld [vmem:[%s2814_s2 + $0x18] sm:$0xff]  ;;  %v607_v43 = vld [vmem:[%s2814_s2 + $0x28] sm:$0xff]  ;;  %v608_v45 = vld [vmem:[%s2814_s2 + $0x30] sm:$0xff] }
   0xf   :  { %1810 = vmatprep.mubr.msk.f32.mxu0 %vm52_vm0, %v21_v12  ;;  %1834 = vmatprep.mubr.msk.f32.mxu1 %vm52_vm0, %v37_v13  ;;  %v1988_v41 = vpack.c.bf16 %v605_v40, %v604_v39  ;;  %v1992_v44 = vpack.c.bf16 %v607_v43, %v606_v42  ;;  %v609_v46 = vld [vmem:[%s2814_s2 + $0x38] sm:$0xff]  ;;  %v1156_v48 = vld [vmem:[%s2815_s3] sm:$0xff]  ;;  %v1157_v49 = vld [vmem:[%s2815_s3 + $0x8] sm:$0xff] }
  0x10   :  { %v1996_v47 = vpack.c.bf16 %v609_v46, %v608_v45  ;;  %v1158_v50 = vld [vmem:[%s2815_s3 + $0x10] sm:$0xff]  ;;  %v2000_v51 = vpack.c.bf16 %v1157_v49, %v1156_v48  ;;  %v1159_v52 = vld [vmem:[%s2815_s3 + $0x18] sm:$0xff] }
  0x11   :  { %1989 = vmatprep.subr.bf16.mxu1 %v1988_v41  ;;  %v2004_v53 = vpack.c.bf16 %v1159_v52, %v1158_v50 }
  0x12   :  { %1811 = vmatmul.mubr.msk.f32.gmra.mrb[4].mxu0 %vm52_vm0, %v22_v17  ;;  %1835 = vmatmul.mubr.msk.f32.gmra.mrb[4].mxu1 %vm52_vm0, %v38_v18 }
  0x13   :  { %1813 = vmatprep.mubr.msk.f32.mxu0 %vm52_vm0, %v23_v19  ;;  %1837 = vmatprep.mubr.msk.f32.mxu1 %vm52_vm0, %v39_v20 }
  0x14   :  { %1991 = vmatpush3.bf16.msra.mxu1 %v1988_v41  ;;  %2001 = vmatprep.subr.bf16.mxu0 %v2000_v51 }
  0x15   :  { %1993 = vmatprep.subr.bf16.mxu1 %v1992_v44  ;;  %2003 = vmatpush3.bf16.msra.mxu0 %v2000_v51 }
  0x16   :  { %1814 = vmatmul.mubr.msk.f32.gmra.mrb[6].mxu0 %vm52_vm0, %v24_v21  ;;  %1838 = vmatmul.mubr.msk.f32.gmra.mrb[6].mxu1 %vm52_vm0, %v40_v22 }
  0x17   :  { %1816 = vmatprep.mubr.msk.f32.mxu0 %vm52_vm0, %v25_v23  ;;  %1840 = vmatprep.mubr.msk.f32.mxu1 %vm52_vm0, %v41_v24 }
  0x18   :  { %1995 = vmatpush3.bf16.msra.mxu1 %v1992_v44  ;;  %2005 = vmatprep.subr.bf16.mxu0 %v2004_v53 }
  0x19   :  { %1997 = vmatprep.subr.bf16.mxu1 %v1996_v47  ;;  %2007 = vmatpush3.bf16.msra.mxu0 %v2004_v53 }
  0x1a   :  { %1817 = vmatmul.mubr.msk.f32.gmra.mrb[8].mxu0 %vm52_vm0, %v26_v25  ;;  %1841 = vmatmul.mubr.msk.f32.gmra.mrb[8].mxu1 %vm52_vm0, %v42_v26 }
  0x1b   :  { %1819 = vmatprep.mubr.msk.f32.mxu0 %vm52_vm0, %v27_v27  ;;  %1843 = vmatprep.mubr.msk.f32.mxu1 %vm52_vm0, %v43_v28 }
  0x1c   :  { %1999 = vmatpush3.bf16.msra.mxu1 %v1996_v47 }
  0x1e   :  { %1820 = vmatmul.mubr.msk.f32.gmra.mrb[10].mxu0 %vm52_vm0, %v28_v29  ;;  %1844 = vmatmul.mubr.msk.f32.gmra.mrb[10].mxu1 %vm52_vm0, %v44_v30 }
  0x1f   :  { %1822 = vmatprep.mubr.msk.f32.mxu0 %vm52_vm0, %v29_v31  ;;  %1846 = vmatprep.mubr.msk.f32.mxu1 %vm52_vm0, %v45_v32 }
  0x22   :  { %1823 = vmatmul.mubr.msk.f32.gmra.mrb[12].mxu0 %vm52_vm0, %v30_v33  ;;  %1847 = vmatmul.mubr.msk.f32.gmra.mrb[12].mxu1 %vm52_vm0, %v46_v34 }
  0x23   :  { %1825 = vmatprep.mubr.msk.f32.mxu0 %vm52_vm0, %v31_v35  ;;  %1849 = vmatprep.mubr.msk.f32.mxu1 %vm52_vm0, %v47_v36 }
  0x26   :  { %1826 = vmatmul.mubr.msk.f32.gmra.mrb[14].mxu0 %vm52_vm0, %v32_v37  ;;  %1850 = vmatmul.mubr.msk.f32.gmra.mrb[14].mxu1 %vm52_vm0, %v48_v38 }
  0xdd   :  { %v2410_v54 = vpop.f32.mrb[0].mxu0  ;;  %v2412_v55 = vpop.f32.mrb[0].mxu1 }
  0xde   :  { %v1556_v56 = vmul.f32 -1.442695, %v2410_v54  ;;  %v2415_v57 = vpop.f32.mrb[1].mxu0  ;;  %v2417_v58 = vpop.f32.mrb[1].mxu1 }
  0xdf   :  { %v1555_v59 = vmul.f32 -1.442695, %v2415_v57 }
  0xe0   :  { %2020 = vpow2.f32 %v1556_v56 }
  0xe1   :  { %2022 = vpow2.f32 %v1555_v59  ;;  %v2420_v60 = vpop.f32.mrb[2].mxu0  ;;  %v2422_v61 = vpop.f32.mrb[2].mxu1 }
  0xe2   :  { %v1558_v62 = vmul.f32 -1.442695, %v2420_v60  ;;  %v2425_v63 = vpop.f32.mrb[3].mxu0  ;;  %v2427_v0 = vpop.f32.mrb[3].mxu1 }
  0xe3   :  { %v1557_v1 = vmul.f32 -1.442695, %v2425_v63 }
  0xe4   :  { %2024 = vpow2.f32 %v1558_v62 }
  0xe5   :  { %2026 = vpow2.f32 %v1557_v1  ;;  %v2430_v2 = vpop.f32.mrb[4].mxu0  ;;  %v2432_v3 = vpop.f32.mrb[4].mxu1 }
  0xe6   :  { %v1560_v4 = vmul.f32 -1.442695, %v2430_v2  ;;  %v2435_v5 = vpop.f32.mrb[5].mxu0  ;;  %v2437_v6 = vpop.f32.mrb[5].mxu1 }
  0xe7   :  { %v1559_v7 = vmul.f32 -1.442695, %v2435_v5 }
  0xe8   :  { %2028 = vpow2.f32 %v1560_v4 }
  0xe9   :  { %2030 = vpow2.f32 %v1559_v7  ;;  %v2440_v8 = vpop.f32.mrb[6].mxu0  ;;  %v2442_v9 = vpop.f32.mrb[6].mxu1 }
  0xea   :  { %v2021_v10 = vpop.eup %2020  ;;  %v2444_v11 = vpop.f32.mrb[7].mxu0  ;;  %v1562_v16 = vmul.f32 -1.442695, %v2440_v8 }
  0xeb   :  { %v2446_v12 = vpop.f32.mrb[7].mxu1  ;;  %v2023_v13 = vpop.eup %2022  ;;  %v475_v14 = vadd.f32 1.0, %v2021_v10  ;;  %v1561_v31 = vmul.f32 -1.442695, %v2444_v11 }
  0xec   :  { %v474_v15 = vadd.f32 1.0, %v2023_v13 }
  0xed   :  { %2032 = vrcp.f32 %v475_v14  ;;  %v2449_v17 = vpop.f32.mrb[8].mxu0  ;;  %v2451_v18 = vpop.f32.mrb[8].mxu1 }
  0xee   :  { %v2025_v19 = vpop.eup %2024  ;;  %2034 = vrcp.f32 %v474_v15  ;;  %v2453_v20 = vpop.f32.mrb[9].mxu0  ;;  %v1564_v38 = vmul.f32 -1.442695, %v2449_v17  ;;  %v1571_v15 = vmul.f32 -1.442695, %v2417_v58 }
  0xef   :  { %v2027_v21 = vpop.eup %2026  ;;  %v477_v22 = vadd.f32 1.0, %v2025_v19  ;;  %v2455_v23 = vpop.f32.mrb[9].mxu1  ;;  %2036 = vpow2.f32 %v1562_v16  ;;  %v1563_v41 = vmul.f32 -1.442695, %v2453_v20 }
  0xf0   :  { %v476_v24 = vadd.f32 1.0, %v2027_v21  ;;  %v1572_v21 = vmul.f32 -1.442695, %v2412_v55 }
  0xf1   :  { %2038 = vrcp.f32 %v477_v22  ;;  %v2457_v25 = vpop.f32.mrb[10].mxu0  ;;  %v2459_v26 = vpop.f32.mrb[10].mxu1 }
  0xf2   :  { %v2029_v27 = vpop.eup %2028  ;;  %2040 = vrcp.f32 %v476_v24  ;;  %v2461_v28 = vpop.f32.mrb[11].mxu0  ;;  %v1566_v50 = vmul.f32 -1.442695, %v2457_v25 }
  0xf3   :  { %v2031_v29 = vpop.eup %2030  ;;  %v479_v30 = vadd.f32 1.0, %v2029_v27  ;;  %v2464_v32 = vpop.f32.mrb[11].mxu1  ;;  %v1565_v52 = vmul.f32 -1.442695, %v2461_v28 }
  0xf4   :  { %v478_v33 = vadd.f32 1.0, %v2031_v29 }
  0xf5   :  { %2042 = vrcp.f32 %v479_v30  ;;  %v2466_v34 = vpop.f32.mrb[12].mxu0  ;;  %v2468_v35 = vpop.f32.mrb[12].mxu1 }
  0xf6   :  { %2044 = vrcp.f32 %v478_v33  ;;  %v2470_v36 = vpop.f32.mrb[13].mxu0  ;;  %v2473_v39 = vpop.f32.mrb[13].mxu1  ;;  %v1568_v59 = vmul.f32 -1.442695, %v2466_v34 }
  0xf7   :  { %v2033_v37 = vpop.eup %2032  ;;  %2046 = vpow2.f32 %v1561_v31  ;;  %v1567_v7 = vmul.f32 -1.442695, %v2470_v36 }
  0xf8   :  { %v2035_v40 = vpop.eup %2034  ;;  %v571_v46 = vmul.f32 %v2033_v37, %v2410_v54  ;;  %2048 = vpow2.f32 %v1564_v38  ;;  %v1573_v38 = vmul.f32 -1.442695, %v2427_v0 }
  0xf9   :  { %v570_v42 = vmul.f32 %v2035_v40, %v2415_v57  ;;  %v2477_v43 = vpop.f32.mrb[14].mxu0  ;;  %v2479_v44 = vpop.f32.mrb[14].mxu1  ;;  %2050 = vpow2.f32 %v1563_v41 }
  0xfa   :  { %v2037_v45 = vpop.eup %2036  ;;  %v2482_v47 = vpop.f32.mrb[15].mxu0  ;;  %2052 = vpow2.f32 %v1566_v50  ;;  %v1570_v29 = vmul.f32 -1.442695, %v2477_v43 }
  0xfb   :  { %v2484_v48 = vpop.f32.mrb[15].mxu1  ;;  %v2039_v49 = vpop.eup %2038  ;;  %1868 = vmatprep.mubr.msk.f32.mxu1 %vm610_vm2, %v570_v42  ;;  %v481_v56 = vadd.f32 1.0, %v2037_v45  ;;  %2054 = vpow2.f32 %v1565_v52  ;;  %v1569_v42 = vmul.f32 -1.442695, %v2482_v47 }
  0xfc   :  { %v2041_v51 = vpop.eup %2040  ;;  %1869 = vmatmul.mubr.msk.f32.vlgmr.msra.gmra.mrb[16].mxu1 %vm610_vm2, %v571_v46  ;;  %v573_v54 = vmul.f32 %v2039_v49, %v2420_v60  ;;  %v1574_v46 = vmul.f32 -1.442695, %v2422_v61 }
  0xfd   :  { %v572_v53 = vmul.f32 %v2041_v51, %v2425_v63  ;;  %2056 = vrcp.f32 %v481_v56 }
  0xfe   :  { %2058 = vpow2.f32 %v1568_v59 }
  0xff   :  { %v2043_v57 = vpop.eup %2042  ;;  %1871 = vmatprep.mubr.msk.f32.mxu1 %vm610_vm2, %v572_v53  ;;  %v1576_v53 = vmul.f32 -1.442695, %v2432_v3 }
 0x100   :  { %v2045_v62 = vpop.eup %2044  ;;  %1872 = vmatmul.mubr.msk.f32.gmra.mrb[18].mxu1 %vm610_vm2, %v573_v54  ;;  %v575_v63 = vmul.f32 %v2043_v57, %v2430_v2 }
 0x101   :  { %v2047_v1 = vpop.eup %2046  ;;  %v574_v4 = vmul.f32 %v2045_v62, %v2435_v5 }
 0x102   :  { %v480_v60 = vadd.f32 1.0, %v2047_v1  ;;  %v2049_v10 = vpop.eup %2048 }
 0x103   :  { %1874 = vmatprep.mubr.msk.f32.mxu1 %vm610_vm2, %v574_v4  ;;  %v2051_v13 = vpop.eup %2050  ;;  %v483_v14 = vadd.f32 1.0, %v2049_v10  ;;  %v1578_v4 = vmul.f32 -1.442695, %v2442_v9 }
 0x104   :  { %2060 = vrcp.f32 %v480_v60  ;;  %1875 = vmatmul.mubr.msk.f32.gmra.mrb[20].mxu1 %vm610_vm2, %v575_v63  ;;  %v482_v16 = vadd.f32 1.0, %v2051_v13  ;;  %v2053_v5 = vpop.eup %2052  ;;  %v1579_v63 = vmul.f32 -1.442695, %v2455_v23 }
 0x105   :  { %2062 = vpow2.f32 %v1567_v7  ;;  %v2055_v19 = vpop.eup %2054  ;;  %v485_v2 = vadd.f32 1.0, %v2053_v5 }
 0x106   :  { %2064 = vrcp.f32 %v483_v14  ;;  %v484_v22 = vadd.f32 1.0, %v2055_v19  ;;  %v1581_v19 = vmul.f32 -1.442695, %v2464_v32 }
 0x107   :  { %2066 = vrcp.f32 %v482_v16  ;;  %v2057_v24 = vpop.eup %2056  ;;  %v1580_v16 = vmul.f32 -1.442695, %v2451_v18 }
 0x108   :  { %2068 = vpow2.f32 %v1571_v15  ;;  %v2059_v27 = vpop.eup %2058  ;;  %v577_v40 = vmul.f32 %v2057_v24, %v2440_v8  ;;  %v1575_v8 = vmul.f32 -1.442695, %v2437_v6  ;;  %v1583_v24 = vmul.f32 -1.442695, %v2473_v39 }
 0x109   :  { %2070 = vrcp.f32 %v485_v2  ;;  %v487_v31 = vadd.f32 1.0, %v2059_v27 }
 0x10a   :  { %2072 = vrcp.f32 %v484_v22  ;;  %v1582_v22 = vmul.f32 -1.442695, %v2459_v26 }
 0x10b   :  { %2074 = vpow2.f32 %v1572_v21 }
 0x10c   :  { %2076 = vrcp.f32 %v487_v31 }
 0x10d   :  { %2078 = vpow2.f32 %v1570_v29 }
 0x10e   :  { %v2061_v30 = vpop.eup %2060 }
 0x10f   :  { %v2063_v33 = vpop.eup %2062  ;;  %v576_v37 = vmul.f32 %v2061_v30, %v2444_v11 }
 0x110   :  { %v486_v41 = vadd.f32 1.0, %v2063_v33  ;;  %v2065_v45 = vpop.eup %2064  ;;  %v1584_v33 = vmul.f32 -1.442695, %v2468_v35 }
 0x111   :  { %1877 = vmatprep.mubr.msk.f32.mxu1 %vm610_vm2, %v576_v37  ;;  %v2067_v49 = vpop.eup %2066  ;;  %v579_v51 = vmul.f32 %v2065_v45, %v2449_v17 }
 0x112   :  { %2080 = vrcp.f32 %v486_v41  ;;  %1878 = vmatmul.mubr.msk.f32.gmra.mrb[22].mxu1 %vm610_vm2, %v577_v40  ;;  %v578_v11 = vmul.f32 %v2067_v49, %v2453_v20  ;;  %v2069_v50 = vpop.eup %2068  ;;  %v1577_v20 = vmul.f32 -1.442695, %v2446_v12 }
 0x113   :  { %2082 = vpow2.f32 %v1573_v38  ;;  %v2071_v52 = vpop.eup %2070  ;;  %v490_v17 = vadd.f32 1.0, %v2069_v50  ;;  %v1585_v38 = vmul.f32 -1.442695, %v2484_v48 }
 0x114   :  { %2084 = vpow2.f32 %v1569_v42  ;;  %1880 = vmatprep.mubr.msk.f32.mxu1 %vm610_vm2, %v578_v11  ;;  %v2073_v54 = vpop.eup %2072  ;;  %v581_v59 = vmul.f32 %v2071_v52, %v2457_v25 }
 0x115   :  { %2086 = vpow2.f32 %v1574_v46  ;;  %v580_v56 = vmul.f32 %v2073_v54, %v2461_v28  ;;  %v2075_v57 = vpop.eup %2074  ;;  %v1586_v46 = vmul.f32 -1.442695, %v2479_v44 }
 0x116   :  { %1881 = vmatmul.mubr.msk.f32.gmra.mrb[24].mxu1 %vm610_vm2, %v579_v51  ;;  %2088 = vpow2.f32 %v1575_v8  ;;  %v2077_v62 = vpop.eup %2076  ;;  %v491_v14 = vadd.f32 1.0, %v2075_v57 }
 0x117   :  { %2090 = vpow2.f32 %v1576_v53  ;;  %1883 = vmatprep.mubr.msk.f32.mxu1 %vm610_vm2, %v580_v56  ;;  %v2079_v1 = vpop.eup %2078  ;;  %v583_v25 = vmul.f32 %v2077_v62, %v2466_v34 }
 0x118   :  { %2092 = vpow2.f32 %v1577_v20  ;;  %v489_v60 = vadd.f32 1.0, %v2079_v1 }
 0x119   :  { %2094 = vrcp.f32 %v490_v17 }
 0x11a   :  { %1884 = vmatmul.mubr.msk.f32.gmra.mrb[26].mxu1 %vm610_vm2, %v581_v59  ;;  %2096 = vpow2.f32 %v1578_v4 }
 0x11b   :  { %2098 = vpow2.f32 %v1579_v63 }
 0x11c   :  { %v2081_v7 = vpop.eup %2080  ;;  %2100 = vrcp.f32 %v489_v60 }
 0x11d   :  { %v582_v28 = vmul.f32 %v2081_v7, %v2470_v36  ;;  %v2083_v10 = vpop.eup %2082 }
 0x11e   :  { %v2085_v13 = vpop.eup %2084  ;;  %v492_v36 = vadd.f32 1.0, %v2083_v10 }
 0x11f   :  { %1886 = vmatprep.mubr.msk.f32.mxu1 %vm610_vm2, %v582_v28  ;;  %v2087_v15 = vpop.eup %2086  ;;  %v488_v5 = vadd.f32 1.0, %v2085_v13 }
 0x120   :  { %1887 = vmatmul.mubr.msk.f32.gmra.mrb[28].mxu1 %vm610_vm2, %v583_v25  ;;  %v2089_v2 = vpop.eup %2088  ;;  %v493_v34 = vadd.f32 1.0, %v2087_v15 }
 0x121   :  { %2102 = vrcp.f32 %v488_v5  ;;  %v2091_v21 = vpop.eup %2090  ;;  %v494_v27 = vadd.f32 1.0, %v2089_v2 }
 0x122   :  { %2104 = vrcp.f32 %v491_v14  ;;  %v2093_v29 = vpop.eup %2092  ;;  %v495_v30 = vadd.f32 1.0, %v2091_v21 }
 0x123   :  { %2106 = vpow2.f32 %v1580_v16  ;;  %v2095_v31 = vpop.eup %2094  ;;  %v496_v41 = vadd.f32 1.0, %v2093_v29 }
 0x124   :  { %2108 = vpow2.f32 %v1581_v19  ;;  %v2097_v37 = vpop.eup %2096  ;;  %v586_v54 = vmul.f32 %v2095_v31, %v2417_v58 }
 0x125   :  { %2110 = vrcp.f32 %v492_v36  ;;  %v2099_v40 = vpop.eup %2098  ;;  %v497_v11 = vadd.f32 1.0, %v2097_v37 }
 0x126   :  { %2112 = vrcp.f32 %v493_v34  ;;  %v2101_v42 = vpop.eup %2100  ;;  %v498_v51 = vadd.f32 1.0, %v2099_v40 }
 0x127   :  { %2114 = vpow2.f32 %v1582_v22  ;;  %v585_v52 = vmul.f32 %v2101_v42, %v2477_v43 }
 0x128   :  { %2116 = vpow2.f32 %v1583_v24 }
 0x129   :  { %2118 = vrcp.f32 %v494_v27 }
 0x12a   :  { %2120 = vrcp.f32 %v495_v30 }
 0x12b   :  { %v2103_v45 = vpop.eup %2102  ;;  %2122 = vpow2.f32 %v1584_v33 }
 0x12c   :  { %v2105_v49 = vpop.eup %2104  ;;  %v584_v50 = vmul.f32 %v2103_v45, %v2482_v47  ;;  %2124 = vpow2.f32 %v1585_v38 }
 0x12d   :  { %v2107_v8 = vpop.eup %2106  ;;  %2126 = vrcp.f32 %v496_v41  ;;  %v587_v59 = vmul.f32 %v2105_v49, %v2412_v55 }
 0x12e   :  { %v2109_v53 = vpop.eup %2108  ;;  %1889 = vmatprep.mubr.msk.f32.mxu1 %vm610_vm2, %v584_v50  ;;  %2128 = vpow2.f32 %v1586_v46  ;;  %v499_v20 = vadd.f32 1.0, %v2107_v8 }
 0x12f   :  { %v2111_v56 = vpop.eup %2110  ;;  %1890 = vmatmul.mubr.msk.f32.gmra.mrb[30].mxu1 %vm610_vm2, %v585_v52  ;;  %2130 = vrcp.f32 %v497_v11  ;;  %v500_v62 = vadd.f32 1.0, %v2109_v53 }
 0x130   :  { %v2113_v57 = vpop.eup %2112  ;;  %1892 = vmatprep.mubr.msk.f32.mxu1 %vm610_vm2, %v586_v54  ;;  %2132 = vrcp.f32 %v498_v51  ;;  %v588_v17 = vmul.f32 %v2111_v56, %v2427_v0 }
 0x131   :  { %v2115_v47 = vpop.eup %2114  ;;  %2134 = vrcp.f32 %v499_v20  ;;  %v589_v63 = vmul.f32 %v2113_v57, %v2422_v61 }
 0x132   :  { %v2117_v43 = vpop.eup %2116  ;;  %v501_v4 = vadd.f32 1.0, %v2115_v47  ;;  %2136 = vrcp.f32 %v500_v62 }
 0x133   :  { %v2119_v58 = vpop.eup %2118  ;;  %1893 = vmatmul.mubr.msk.f32.gmra.mrb[32].mxu1 %vm610_vm2, %v587_v59  ;;  %v502_v28 = vadd.f32 1.0, %v2117_v43 }
 0x134   :  { %v2121_v1 = vpop.eup %2120  ;;  %1895 = vmatprep.mubr.msk.f32.mxu1 %vm610_vm2, %v588_v17  ;;  %v590_v55 = vmul.f32 %v2119_v58, %v2437_v6  ;;  %2138 = vrcp.f32 %v501_v4 }
 0x135   :  { %v2123_v7 = vpop.eup %2122  ;;  %v591_v13 = vmul.f32 %v2121_v1, %v2432_v3  ;;  %2140 = vrcp.f32 %v502_v28 }
 0x136   :  { %v2125_v60 = vpop.eup %2124  ;;  %v503_v0 = vadd.f32 1.0, %v2123_v7 }
 0x137   :  { %v2127_v10 = vpop.eup %2126  ;;  %1896 = vmatmul.mubr.msk.f32.gmra.mrb[34].mxu1 %vm610_vm2, %v589_v63  ;;  %v504_v14 = vadd.f32 1.0, %v2125_v60 }
 0x138   :  { %1898 = vmatprep.mubr.msk.f32.mxu1 %vm610_vm2, %v590_v55  ;;  %v2129_v25 = vpop.eup %2128  ;;  %v592_v61 = vmul.f32 %v2127_v10, %v2446_v12  ;;  %2142 = vrcp.f32 %v503_v0 }
 0x139   :  { %v2131_v15 = vpop.eup %2130  ;;  %v505_v6 = vadd.f32 1.0, %v2129_v25  ;;  %2144 = vrcp.f32 %v504_v14 }
 0x13a   :  { %v2133_v16 = vpop.eup %2132  ;;  %v593_v5 = vmul.f32 %v2131_v15, %v2442_v9 }
 0x13b   :  { %1899 = vmatmul.mubr.msk.f32.gmra.mrb[36].mxu1 %vm610_vm2, %v591_v13  ;;  %v2135_v19 = vpop.eup %2134  ;;  %v594_v36 = vmul.f32 %v2133_v16, %v2455_v23  ;;  %2146 = vrcp.f32 %v505_v6 }
 0x13c   :  { %1901 = vmatprep.mubr.msk.f32.mxu1 %vm610_vm2, %v592_v61  ;;  %v2137_v2 = vpop.eup %2136  ;;  %v595_v3 = vmul.f32 %v2135_v19, %v2451_v18 }
 0x13d   :  { %v596_v34 = vmul.f32 %v2137_v2, %v2464_v32 }
 0x13e   :  { %v2139_v12 = vpop.eup %2138 }
 0x13f   :  { %1902 = vmatmul.mubr.msk.f32.gmra.mrb[38].mxu1 %vm610_vm2, %v593_v5  ;;  %v2141_v21 = vpop.eup %2140  ;;  %v597_v9 = vmul.f32 %v2139_v12, %v2459_v26  ;;  %v1160_v26 = vld [vmem:[%s2815_s3 + $0x20] sm:$0xff] }
 0x140   :  { %1904 = vmatprep.mubr.msk.f32.mxu1 %vm610_vm2, %v594_v36  ;;  %v598_v23 = vmul.f32 %v2141_v21, %v2473_v39  ;;  %v1161_v39 = vld [vmem:[%s2815_s3 + $0x28] sm:$0xff] }
 0x142   :  { %v2143_v22 = vpop.eup %2142 }
 0x143   :  { %1905 = vmatmul.mubr.msk.f32.gmra.mrb[40].mxu1 %vm610_vm2, %v595_v3  ;;  %v2145_v24 = vpop.eup %2144  ;;  %v599_v18 = vmul.f32 %v2143_v22, %v2468_v35  ;;  %v2008_v35 = vpack.c.bf16 %v1161_v39, %v1160_v26 }
 0x144   :  { %1907 = vmatprep.mubr.msk.f32.mxu1 %vm610_vm2, %v596_v34  ;;  %v600_v32 = vmul.f32 %v2145_v24, %v2484_v48  ;;  %v1162_v48 = vld [vmem:[%s2815_s3 + $0x30] sm:$0xff] }
 0x145   :  { %v2147_v27 = vpop.eup %2146  ;;  %2009 = vmatprep.subr.bf16.mxu0 %v2008_v35 }
 0x146   :  { %v601_v29 = vmul.f32 %v2147_v27, %v2479_v44  ;;  %2011 = vmatpush3.bf16.msra.mxu0 %v2008_v35  ;;  %v1163_v44 = vld [vmem:[%s2815_s3 + $0x38] sm:$0xff] }
 0x147   :  { %1908 = vmatmul.mubr.msk.f32.gmra.mrb[42].mxu1 %vm610_vm2, %v597_v9  ;;  %v2012_v30 = vpack.c.bf16 %v1163_v44, %v1162_v48 }
 0x148   :  { %1910 = vmatprep.mubr.msk.f32.mxu1 %vm610_vm2, %v598_v23 }
 0x149   :  { %2013 = vmatprep.subr.bf16.mxu0 %v2012_v30 }
 0x14a   :  { %2015 = vmatpush3.bf16.msra.mxu0 %v2012_v30 }
 0x14b   :  { %1911 = vmatmul.mubr.msk.f32.gmra.mrb[44].mxu1 %vm610_vm2, %v599_v18 }
 0x14c   :  { %1913 = vmatprep.mubr.msk.f32.mxu1 %vm610_vm2, %v600_v32 }
 0x14f   :  { %1914 = vmatmul.mubr.msk.f32.gmra.mrb[46].mxu1 %vm610_vm2, %v601_v29 }
 0x1cf   :  { %v1870_v31 = vpop.f32.mrb[16].mxu1 }
 0x1d0   :  { %v966_v33 = vmul.f32 1.442695, %v1870_v31  ;;  %v773_v37 = vpop.f32.mrb[17].mxu1  ;;  %vm933_vm3 = vcmp.gt.f32.partialorder %v1870_v31, 0.0 }
 0x1d1   :  { %v964_v38 = vmul.f32 1.442695, %v773_v37  ;;  %vm932_vm4 = vcmp.gt.f32.partialorder %v773_v37, 0.0 }
 0x1d2   :  { %2148 = vpow2.f32 %v966_v33 }
 0x1d3   :  { %2150 = vpow2.f32 %v964_v38  ;;  %v1873_v40 = vpop.f32.mrb[18].mxu1 }
 0x1d4   :  { %v970_v41 = vmul.f32 1.442695, %v1873_v40  ;;  %v783_v42 = vpop.f32.mrb[19].mxu1  ;;  %vm935_vm5 = vcmp.gt.f32.partialorder %v1873_v40, 0.0 }
 0x1d5   :  { %v968_v45 = vmul.f32 1.442695, %v783_v42  ;;  %vm934_vm6 = vcmp.gt.f32.partialorder %v783_v42, 0.0 }
 0x1d6   :  { %2152 = vpow2.f32 %v970_v41 }
 0x1d7   :  { %2154 = vpow2.f32 %v968_v45  ;;  %v1876_v46 = vpop.f32.mrb[20].mxu1 }
 0x1d8   :  { %v974_v49 = vmul.f32 1.442695, %v1876_v46  ;;  %v793_v11 = vpop.f32.mrb[21].mxu1  ;;  %vm937_vm7 = vcmp.gt.f32.partialorder %v1876_v46, 0.0 }
 0x1d9   :  { %v972_v50 = vmul.f32 1.442695, %v793_v11  ;;  %vm936_vm8 = vcmp.gt.f32.partialorder %v793_v11, 0.0 }
 0x1da   :  { %2156 = vpow2.f32 %v974_v49 }
 0x1db   :  { %2158 = vpow2.f32 %v972_v50 }
 0x1dc   :  { %v2149_v8 = vpop.eup %2148 }
 0x1dd   :  { %v2151_v51 = vpop.eup %2150  ;;  %v1620_v52 = vadd.f32 -1.0, %v2149_v8 }
 0x1de   :  { %v1619_v53 = vadd.f32 -1.0, %v2151_v51 }
 0x1df   :  { %v1061_v54 = vmul.f32 1.6732632, %v1620_v52 }
 0x1e0   :  { %v2153_v56 = vpop.eup %2152  ;;  %v1060_v57 = vmul.f32 1.6732632, %v1619_v53 }
 0x1e1   :  { %v2155_v20 = vpop.eup %2154  ;;  %v1093_v47 = vsel %vm933_vm3, %v1870_v31, %v1061_v54  ;;  %v1622_v59 = vadd.f32 -1.0, %v2153_v56 }
 0x1e2   :  { %v1092_v62 = vsel %vm932_vm4, %v773_v37, %v1060_v57  ;;  %v1621_v43 = vadd.f32 -1.0, %v2155_v20  ;;  %v1125_v4 = vmul.f32 1.050701, %v1093_v47 }
 0x1e3   :  { %v1124_v17 = vmul.f32 1.050701, %v1092_v62  ;;  %v1063_v58 = vmul.f32 1.6732632, %v1622_v59 }
 0x1e4   :  { %v2157_v1 = vpop.eup %2156  ;;  %v1062_v7 = vmul.f32 1.6732632, %v1621_v43 }
 0x1e5   :  { %v2159_v63 = vpop.eup %2158  ;;  %v1095_v28 = vsel %vm935_vm5, %v1873_v40, %v1063_v58  ;;  %v1624_v60 = vadd.f32 -1.0, %v2157_v1  ;;  %v1879_v55 = vpop.f32.mrb[22].mxu1  ;;  %1932 = vmatprep.mubr.msk.f32.mxu0 %vm610_vm2, %v1124_v17 }
 0x1e6   :  { %v1094_v10 = vsel %vm934_vm6, %v783_v42, %v1062_v7  ;;  %v1623_v0 = vadd.f32 -1.0, %v2159_v63  ;;  %v803_v25 = vpop.f32.mrb[23].mxu1  ;;  %1933 = vmatmul.mubr.msk.f32.vlgmr.msra.gmra.mrb[16].mxu0 %vm610_vm2, %v1125_v4  ;;  %v978_v15 = vmul.f32 1.442695, %v1879_v55  ;;  %v1127_v61 = vmul.f32 1.050701, %v1095_v28 }
 0x1e7   :  { %v1126_v13 = vmul.f32 1.050701, %v1094_v10  ;;  %v1065_v14 = vmul.f32 1.6732632, %v1624_v60  ;;  %v976_v6 = vmul.f32 1.442695, %v803_v25 }
 0x1e8   :  { %v1064_v16 = vmul.f32 1.6732632, %v1623_v0  ;;  %2160 = vpow2.f32 %v978_v15  ;;  %vm939_vm9 = vcmp.gt.f32.partialorder %v1879_v55, 0.0  ;;  %vm938_vm10 = vcmp.gt.f32.partialorder %v803_v25, 0.0 }
 0x1e9   :  { %v1097_v5 = vsel %vm937_vm7, %v1876_v46, %v1065_v14  ;;  %1935 = vmatprep.mubr.msk.f32.mxu0 %vm610_vm2, %v1126_v13  ;;  %2162 = vpow2.f32 %v976_v6  ;;  %v1882_v36 = vpop.f32.mrb[24].mxu1 }
 0x1ea   :  { %v1096_v19 = vsel %vm936_vm8, %v793_v11, %v1064_v16  ;;  %1936 = vmatmul.mubr.msk.f32.gmra.mrb[18].mxu0 %vm610_vm2, %v1127_v61  ;;  %v982_v3 = vmul.f32 1.442695, %v1882_v36  ;;  %v813_v12 = vpop.f32.mrb[25].mxu1  ;;  %v1129_v34 = vmul.f32 1.050701, %v1097_v5  ;;  %vm941_vm11 = vcmp.gt.f32.partialorder %v1882_v36, 0.0 }
 0x1eb   :  { %v1128_v2 = vmul.f32 1.050701, %v1096_v19  ;;  %v980_v21 = vmul.f32 1.442695, %v813_v12  ;;  %vm940_vm12 = vcmp.gt.f32.partialorder %v813_v12, 0.0 }
 0x1ec   :  { %2164 = vpow2.f32 %v982_v3 }
 0x1ed   :  { %1938 = vmatprep.mubr.msk.f32.mxu0 %vm610_vm2, %v1128_v2  ;;  %2166 = vpow2.f32 %v980_v21  ;;  %v1885_v9 = vpop.f32.mrb[26].mxu1 }
 0x1ee   :  { %1939 = vmatmul.mubr.msk.f32.gmra.mrb[20].mxu0 %vm610_vm2, %v1129_v34  ;;  %v986_v22 = vmul.f32 1.442695, %v1885_v9  ;;  %v823_v23 = vpop.f32.mrb[27].mxu1  ;;  %vm943_vm13 = vcmp.gt.f32.partialorder %v1885_v9, 0.0 }
 0x1ef   :  { %v984_v24 = vmul.f32 1.442695, %v823_v23  ;;  %vm942_vm14 = vcmp.gt.f32.partialorder %v823_v23, 0.0 }
 0x1f0   :  { %2168 = vpow2.f32 %v986_v22 }
 0x1f1   :  { %2170 = vpow2.f32 %v984_v24 }
 0x1f2   :  { %v2161_v18 = vpop.eup %2160 }
 0x1f3   :  { %v1888_v27 = vpop.f32.mrb[28].mxu1  ;;  %v2163_v32 = vpop.eup %2162  ;;  %v1626_v29 = vadd.f32 -1.0, %v2161_v18 }
 0x1f4   :  { %v990_v26 = vmul.f32 1.442695, %v1888_v27  ;;  %v833_v39 = vpop.f32.mrb[29].mxu1  ;;  %v1625_v35 = vadd.f32 -1.0, %v2163_v32  ;;  %vm945_vm15 = vcmp.gt.f32.partialorder %v1888_v27, 0.0 }
 0x1f5   :  { %v988_v48 = vmul.f32 1.442695, %v833_v39  ;;  %v1067_v44 = vmul.f32 1.6732632, %v1626_v29  ;;  %vm944_vm0 = vcmp.gt.f32.partialorder %v833_v39, 0.0 }
 0x1f6   :  { %2172 = vpow2.f32 %v990_v26  ;;  %v2165_v30 = vpop.eup %2164  ;;  %v1066_v31 = vmul.f32 1.6732632, %v1625_v35 }
 0x1f7   :  { %2174 = vpow2.f32 %v988_v48  ;;  %v2167_v33 = vpop.eup %2166  ;;  %v1099_v37 = vsel %vm939_vm9, %v1879_v55, %v1067_v44  ;;  %v1628_v38 = vadd.f32 -1.0, %v2165_v30 }
 0x1f8   :  { %v1098_v40 = vsel %vm938_vm10, %v803_v25, %v1066_v31  ;;  %v1627_v41 = vadd.f32 -1.0, %v2167_v33  ;;  %v1131_v49 = vmul.f32 1.050701, %v1099_v37 }
 0x1f9   :  { %v1130_v42 = vmul.f32 1.050701, %v1098_v40  ;;  %v1069_v45 = vmul.f32 1.6732632, %v1628_v38 }
 0x1fa   :  { %v2169_v46 = vpop.eup %2168  ;;  %v1068_v11 = vmul.f32 1.6732632, %v1627_v41 }
 0x1fb   :  { %v2171_v50 = vpop.eup %2170  ;;  %v1101_v8 = vsel %vm941_vm11, %v1882_v36, %v1069_v45  ;;  %v1630_v51 = vadd.f32 -1.0, %v2169_v46  ;;  %1941 = vmatprep.mubr.msk.f32.mxu0 %vm610_vm2, %v1130_v42 }
 0x1fc   :  { %v1100_v52 = vsel %vm940_vm12, %v813_v12, %v1068_v11  ;;  %v1629_v53 = vadd.f32 -1.0, %v2171_v50  ;;  %1942 = vmatmul.mubr.msk.f32.gmra.mrb[22].mxu0 %vm610_vm2, %v1131_v49  ;;  %v1133_v57 = vmul.f32 1.050701, %v1101_v8 }
 0x1fd   :  { %v1132_v54 = vmul.f32 1.050701, %v1100_v52  ;;  %v1071_v56 = vmul.f32 1.6732632, %v1630_v51 }
 0x1fe   :  { %v1070_v20 = vmul.f32 1.6732632, %v1629_v53 }
 0x1ff   :  { %v1103_v59 = vsel %vm943_vm13, %v1885_v9, %v1071_v56  ;;  %1944 = vmatprep.mubr.msk.f32.mxu0 %vm610_vm2, %v1132_v54 }
 0x200   :  { %v2173_v47 = vpop.eup %2172  ;;  %v1102_v43 = vsel %vm942_vm14, %v823_v23, %v1070_v20  ;;  %1945 = vmatmul.mubr.msk.f32.gmra.mrb[24].mxu0 %vm610_vm2, %v1133_v57  ;;  %v1135_v4 = vmul.f32 1.050701, %v1103_v59 }
 0x201   :  { %v2175_v62 = vpop.eup %2174  ;;  %v1632_v17 = vadd.f32 -1.0, %v2173_v47  ;;  %v1134_v58 = vmul.f32 1.050701, %v1102_v43 }
 0x202   :  { %v1631_v1 = vadd.f32 -1.0, %v2175_v62  ;;  %v1891_v63 = vpop.f32.mrb[30].mxu1 }
 0x203   :  { %v1073_v7 = vmul.f32 1.6732632, %v1632_v17  ;;  %v994_v60 = vmul.f32 1.442695, %v1891_v63  ;;  %v843_v55 = vpop.f32.mrb[31].mxu1  ;;  %1947 = vmatprep.mubr.msk.f32.mxu0 %vm610_vm2, %v1134_v58  ;;  %vm947_vm1 = vcmp.gt.f32.partialorder %v1891_v63, 0.0 }
 0x204   :  { %v1072_v28 = vmul.f32 1.6732632, %v1631_v1  ;;  %v992_v0 = vmul.f32 1.442695, %v843_v55  ;;  %1948 = vmatmul.mubr.msk.f32.gmra.mrb[26].mxu0 %vm610_vm2, %v1135_v4  ;;  %vm946_vm3 = vcmp.gt.f32.partialorder %v843_v55, 0.0 }
 0x205   :  { %v1105_v10 = vsel %vm945_vm15, %v1888_v27, %v1073_v7  ;;  %2176 = vpow2.f32 %v994_v60 }
 0x206   :  { %v1104_v25 = vsel %vm944_vm0, %v833_v39, %v1072_v28  ;;  %2178 = vpow2.f32 %v992_v0  ;;  %v1894_v14 = vpop.f32.mrb[32].mxu1  ;;  %v1137_v15 = vmul.f32 1.050701, %v1105_v10 }
 0x207   :  { %v1136_v13 = vmul.f32 1.050701, %v1104_v25  ;;  %v998_v61 = vmul.f32 1.442695, %v1894_v14  ;;  %v853_v16 = vpop.f32.mrb[33].mxu1  ;;  %vm949_vm4 = vcmp.gt.f32.partialorder %v1894_v14, 0.0 }
 0x208   :  { %v996_v6 = vmul.f32 1.442695, %v853_v16  ;;  %vm948_vm5 = vcmp.gt.f32.partialorder %v853_v16, 0.0 }
 0x209   :  { %1950 = vmatprep.mubr.msk.f32.mxu0 %vm610_vm2, %v1136_v13  ;;  %2180 = vpow2.f32 %v998_v61 }
 0x20a   :  { %1951 = vmatmul.mubr.msk.f32.gmra.mrb[28].mxu0 %vm610_vm2, %v1137_v15  ;;  %2182 = vpow2.f32 %v996_v6  ;;  %v2596_v5 = vpop.f32.mrb[34].mxu1 }
 0x20b   :  { %v1002_v19 = vmul.f32 1.442695, %v2596_v5  ;;  %v2599_v36 = vpop.f32.mrb[35].mxu1  ;;  %vm951_vm6 = vcmp.gt.f32.partialorder %v2596_v5, 0.0 }
 0x20c   :  { %v1000_v2 = vmul.f32 1.442695, %v2599_v36  ;;  %vm950_vm7 = vcmp.gt.f32.partialorder %v2599_v36, 0.0 }
 0x20d   :  { %2184 = vpow2.f32 %v1002_v19 }
 0x20e   :  { %2186 = vpow2.f32 %v1000_v2  ;;  %v2602_v3 = vpop.f32.mrb[36].mxu1 }
 0x20f   :  { %v2177_v12 = vpop.eup %2176  ;;  %v1006_v34 = vmul.f32 1.442695, %v2602_v3  ;;  %v2605_v21 = vpop.f32.mrb[37].mxu1  ;;  %vm953_vm8 = vcmp.gt.f32.partialorder %v2602_v3, 0.0 }
 0x210   :  { %v2179_v9 = vpop.eup %2178  ;;  %v1634_v22 = vadd.f32 -1.0, %v2177_v12  ;;  %v1004_v23 = vmul.f32 1.442695, %v2605_v21  ;;  %vm952_vm9 = vcmp.gt.f32.partialorder %v2605_v21, 0.0 }
 0x211   :  { %v1633_v24 = vadd.f32 -1.0, %v2179_v9  ;;  %2188 = vpow2.f32 %v1006_v34 }
 0x212   :  { %v1075_v18 = vmul.f32 1.6732632, %v1634_v22  ;;  %2190 = vpow2.f32 %v1004_v23  ;;  %v2608_v27 = vpop.f32.mrb[38].mxu1 }
 0x213   :  { %v2181_v32 = vpop.eup %2180  ;;  %v1074_v29 = vmul.f32 1.6732632, %v1633_v24  ;;  %v1010_v26 = vmul.f32 1.442695, %v2608_v27  ;;  %v2611_v39 = vpop.f32.mrb[39].mxu1  ;;  %vm955_vm10 = vcmp.gt.f32.partialorder %v2608_v27, 0.0 }
 0x214   :  { %v2183_v35 = vpop.eup %2182  ;;  %v1107_v48 = vsel %vm947_vm1, %v1891_v63, %v1075_v18  ;;  %v1636_v44 = vadd.f32 -1.0, %v2181_v32  ;;  %v1008_v30 = vmul.f32 1.442695, %v2611_v39  ;;  %vm954_vm11 = vcmp.gt.f32.partialorder %v2611_v39, 0.0 }
 0x215   :  { %v1139_v31 = vmul.f32 1.050701, %v1107_v48  ;;  %v1106_v33 = vsel %vm946_vm3, %v843_v55, %v1074_v29  ;;  %v1635_v37 = vadd.f32 -1.0, %v2183_v35  ;;  %2192 = vpow2.f32 %v1010_v26 }
 0x216   :  { %v1138_v38 = vmul.f32 1.050701, %v1106_v33  ;;  %v1077_v40 = vmul.f32 1.6732632, %v1636_v44  ;;  %2194 = vpow2.f32 %v1008_v30  ;;  %v2614_v41 = vpop.f32.mrb[40].mxu1 }
 0x217   :  { %v2185_v42 = vpop.eup %2184  ;;  %v1076_v45 = vmul.f32 1.6732632, %v1635_v37  ;;  %v1014_v46 = vmul.f32 1.442695, %v2614_v41  ;;  %v2617_v49 = vpop.f32.mrb[41].mxu1  ;;  %vm957_vm12 = vcmp.gt.f32.partialorder %v2614_v41, 0.0 }
 0x218   :  { %v2187_v11 = vpop.eup %2186  ;;  %v1109_v50 = vsel %vm949_vm4, %v1894_v14, %v1077_v40  ;;  %v1638_v8 = vadd.f32 -1.0, %v2185_v42  ;;  %v1012_v51 = vmul.f32 1.442695, %v2617_v49  ;;  %1953 = vmatprep.mubr.msk.f32.mxu0 %vm610_vm2, %v1138_v38  ;;  %vm956_vm13 = vcmp.gt.f32.partialorder %v2617_v49, 0.0 }
 0x219   :  { %v1141_v52 = vmul.f32 1.050701, %v1109_v50  ;;  %v1108_v53 = vsel %vm948_vm5, %v853_v16, %v1076_v45  ;;  %v1637_v54 = vadd.f32 -1.0, %v2187_v11  ;;  %2196 = vpow2.f32 %v1014_v46  ;;  %1954 = vmatmul.mubr.msk.f32.gmra.mrb[30].mxu0 %vm610_vm2, %v1139_v31 }
 0x21a   :  { %v1140_v56 = vmul.f32 1.050701, %v1108_v53  ;;  %v1079_v57 = vmul.f32 1.6732632, %v1638_v8  ;;  %2198 = vpow2.f32 %v1012_v51  ;;  %v2622_v20 = vpop.f32.mrb[42].mxu1  ;;  %vm1485_vm5 = vcmask 23552  }
 0x21b   :  { %v2189_v47 = vpop.eup %2188  ;;  %v1078_v59 = vmul.f32 1.6732632, %v1637_v54  ;;  %v1018_v62 = vmul.f32 1.442695, %v2622_v20  ;;  %v2626_v43 = vpop.f32.mrb[43].mxu1  ;;  %vm959_vm14 = vcmp.gt.f32.partialorder %v2622_v20, 0.0 }
 0x21c   :  { %v2191_v17 = vpop.eup %2190  ;;  %v1111_v58 = vsel %vm951_vm6, %v2596_v5, %v1079_v57  ;;  %v1640_v1 = vadd.f32 -1.0, %v2189_v47  ;;  %v1016_v4 = vmul.f32 1.442695, %v2626_v43  ;;  %1956 = vmatprep.mubr.msk.f32.mxu0 %vm610_vm2, %v1140_v56  ;;  %vm958_vm15 = vcmp.gt.f32.partialorder %v2626_v43, 0.0 }
 0x21d   :  { %v1143_v7 = vmul.f32 1.050701, %v1111_v58  ;;  %v1110_v63 = vsel %vm950_vm7, %v2599_v36, %v1078_v59  ;;  %v1639_v28 = vadd.f32 -1.0, %v2191_v17  ;;  %2200 = vpow2.f32 %v1018_v62  ;;  %1957 = vmatmul.mubr.msk.f32.gmra.mrb[32].mxu0 %vm610_vm2, %v1141_v52 }
 0x21e   :  { %v1142_v60 = vmul.f32 1.050701, %v1110_v63  ;;  %v1081_v55 = vmul.f32 1.6732632, %v1640_v1  ;;  %2202 = vpow2.f32 %v1016_v4  ;;  %v2634_v10 = vpop.f32.mrb[44].mxu1 }
 0x21f   :  { %v2193_v0 = vpop.eup %2192  ;;  %v1080_v25 = vmul.f32 1.6732632, %v1639_v28  ;;  %v1022_v13 = vmul.f32 1.442695, %v2634_v10  ;;  %v2638_v14 = vpop.f32.mrb[45].mxu1  ;;  %vm961_vm0 = vcmp.gt.f32.partialorder %v2634_v10, 0.0 }
 0x220   :  { %v2195_v15 = vpop.eup %2194  ;;  %v1113_v61 = vsel %vm953_vm8, %v2602_v3, %v1081_v55  ;;  %v1642_v16 = vadd.f32 -1.0, %v2193_v0  ;;  %v1020_v6 = vmul.f32 1.442695, %v2638_v14  ;;  %1959 = vmatprep.mubr.msk.f32.mxu0 %vm610_vm2, %v1142_v60  ;;  %vm960_vm1 = vcmp.gt.f32.partialorder %v2638_v14, 0.0 }
 0x221   :  { %v1145_v5 = vmul.f32 1.050701, %v1113_v61  ;;  %v1112_v19 = vsel %vm952_vm9, %v2605_v21, %v1080_v25  ;;  %v1641_v36 = vadd.f32 -1.0, %v2195_v15  ;;  %2204 = vpow2.f32 %v1022_v13  ;;  %1960 = vmatmul.mubr.msk.f32.gmra.mrb[34].mxu0 %vm610_vm2, %v1143_v7 }
 0x222   :  { %v1144_v2 = vmul.f32 1.050701, %v1112_v19  ;;  %v1083_v12 = vmul.f32 1.6732632, %v1642_v16  ;;  %2206 = vpow2.f32 %v1020_v6  ;;  %v2646_v34 = vpop.f32.mrb[46].mxu1 }
 0x223   :  { %v2197_v3 = vpop.eup %2196  ;;  %v1082_v9 = vmul.f32 1.6732632, %v1641_v36  ;;  %v1026_v22 = vmul.f32 1.442695, %v2646_v34  ;;  %v2650_v23 = vpop.f32.mrb[47].mxu1  ;;  %vm963_vm3 = vcmp.gt.f32.partialorder %v2646_v34, 0.0 }
 0x224   :  { %v2199_v24 = vpop.eup %2198  ;;  %v1115_v21 = vsel %vm955_vm10, %v2608_v27, %v1083_v12  ;;  %v1644_v18 = vadd.f32 -1.0, %v2197_v3  ;;  %v1024_v32 = vmul.f32 1.442695, %v2650_v23  ;;  %1962 = vmatprep.mubr.msk.f32.mxu0 %vm610_vm2, %v1144_v2  ;;  %vm962_vm4 = vcmp.gt.f32.partialorder %v2650_v23, 0.0 }
 0x225   :  { %v1114_v29 = vsel %vm954_vm11, %v2611_v39, %v1082_v9  ;;  %v1643_v26 = vadd.f32 -1.0, %v2199_v24  ;;  %2208 = vpow2.f32 %v1026_v22  ;;  %1963 = vmatmul.mubr.msk.f32.gmra.mrb[36].mxu0 %vm610_vm2, %v1145_v5  ;;  %v1147_v30 = vmul.f32 1.050701, %v1115_v21 }
 0x226   :  { %v1146_v35 = vmul.f32 1.050701, %v1114_v29  ;;  %v1085_v48 = vmul.f32 1.6732632, %v1644_v18  ;;  %2210 = vpow2.f32 %v1024_v32 }
 0x227   :  { %v2201_v44 = vpop.eup %2200  ;;  %v1084_v27 = vmul.f32 1.6732632, %v1643_v26 }
 0x228   :  { %v2203_v31 = vpop.eup %2202  ;;  %v1117_v33 = vsel %vm957_vm12, %v2614_v41, %v1085_v48  ;;  %v1646_v37 = vadd.f32 -1.0, %v2201_v44  ;;  %1965 = vmatprep.mubr.msk.f32.mxu0 %vm610_vm2, %v1146_v35 }
 0x229   :  { %v1116_v39 = vsel %vm956_vm13, %v2617_v49, %v1084_v27  ;;  %v1645_v38 = vadd.f32 -1.0, %v2203_v31  ;;  %1966 = vmatmul.mubr.msk.f32.gmra.mrb[38].mxu0 %vm610_vm2, %v1147_v30  ;;  %v1149_v46 = vmul.f32 1.050701, %v1117_v33 }
 0x22a   :  { %v1148_v40 = vmul.f32 1.050701, %v1116_v39  ;;  %v1087_v42 = vmul.f32 1.6732632, %v1646_v37 }
 0x22b   :  { %v2205_v45 = vpop.eup %2204  ;;  %v1086_v11 = vmul.f32 1.6732632, %v1645_v38 }
 0x22c   :  { %v2207_v50 = vpop.eup %2206  ;;  %v1119_v41 = vsel %vm959_vm14, %v2622_v20, %v1087_v42  ;;  %v1648_v8 = vadd.f32 -1.0, %v2205_v45  ;;  %1968 = vmatprep.mubr.msk.f32.mxu0 %vm610_vm2, %v1148_v40 }
 0x22d   :  { %v1118_v49 = vsel %vm958_vm15, %v2626_v43, %v1086_v11  ;;  %v1647_v51 = vadd.f32 -1.0, %v2207_v50  ;;  %1969 = vmatmul.mubr.msk.f32.gmra.mrb[40].mxu0 %vm610_vm2, %v1149_v46  ;;  %v1151_v56 = vmul.f32 1.050701, %v1119_v41 }
 0x22e   :  { %v1150_v52 = vmul.f32 1.050701, %v1118_v49  ;;  %v1089_v53 = vmul.f32 1.6732632, %v1648_v8 }
 0x22f   :  { %v2209_v54 = vpop.eup %2208  ;;  %v1088_v57 = vmul.f32 1.6732632, %v1647_v51 }
 0x230   :  { %v2211_v47 = vpop.eup %2210  ;;  %v1121_v20 = vsel %vm961_vm0, %v2634_v10, %v1089_v53  ;;  %v1650_v59 = vadd.f32 -1.0, %v2209_v54  ;;  %1971 = vmatprep.mubr.msk.f32.mxu0 %vm610_vm2, %v1150_v52 }
 0x231   :  { %v1120_v62 = vsel %vm960_vm1, %v2638_v14, %v1088_v57  ;;  %v1649_v43 = vadd.f32 -1.0, %v2211_v47  ;;  %1972 = vmatmul.mubr.msk.f32.gmra.mrb[42].mxu0 %vm610_vm2, %v1151_v56  ;;  %v1153_v1 = vmul.f32 1.050701, %v1121_v20 }
 0x232   :  { %v1152_v17 = vmul.f32 1.050701, %v1120_v62  ;;  %v1091_v58 = vmul.f32 1.6732632, %v1650_v59 }
 0x233   :  { %v1090_v4 = vmul.f32 1.6732632, %v1649_v43 }
 0x234   :  { %v1123_v7 = vsel %vm963_vm3, %v2646_v34, %v1091_v58  ;;  %1974 = vmatprep.mubr.msk.f32.mxu0 %vm610_vm2, %v1152_v17 }
 0x235   :  { %v1122_v63 = vsel %vm962_vm4, %v2650_v23, %v1090_v4  ;;  %1975 = vmatmul.mubr.msk.f32.gmra.mrb[44].mxu0 %vm610_vm2, %v1153_v1  ;;  %v1155_v60 = vmul.f32 1.050701, %v1123_v7 }
 0x236   :  { %v1154_v28 = vmul.f32 1.050701, %v1122_v63 }
 0x238   :  { %1977 = vmatprep.mubr.msk.f32.mxu0 %vm610_vm2, %v1154_v28 }
 0x239   :  { %1978 = vmatmul.mubr.msk.f32.gmra.mrb[46].mxu0 %vm610_vm2, %v1155_v60 }
 0x2b9   :  { %v1934_v55 = vpop.f32.mrb[16].mxu0 }
 0x2ba   :  { %1487 = vst.msk [vmem:[%s2816_s4 + $0x8] sm:$0xff] %vm1485_vm5, %v1934_v55  ;;  %v1326_v10 = vpop.f32.mrb[17].mxu0 }
 0x2bb   :  { %1486 = vst.msk [vmem:[%s2816_s4] sm:$0xff] %vm1485_vm5, %v1326_v10 }
 0x2bd   :  { %v1937_v0 = vpop.f32.mrb[18].mxu0 }
 0x2be   :  { %1489 = vst.msk [vmem:[%s2816_s4 + $0x18] sm:$0xff] %vm1485_vm5, %v1937_v0  ;;  %v1336_v25 = vpop.f32.mrb[19].mxu0 }
 0x2bf   :  { %1488 = vst.msk [vmem:[%s2816_s4 + $0x10] sm:$0xff] %vm1485_vm5, %v1336_v25 }
 0x2c1   :  { %v1940_v13 = vpop.f32.mrb[20].mxu0 }
 0x2c2   :  { %1491 = vst.msk [vmem:[%s2816_s4 + $0x28] sm:$0xff] %vm1485_vm5, %v1940_v13  ;;  %v1346_v14 = vpop.f32.mrb[21].mxu0 }
 0x2c3   :  { %1490 = vst.msk [vmem:[%s2816_s4 + $0x20] sm:$0xff] %vm1485_vm5, %v1346_v14 }
 0x2cf   :  { %v1943_v15 = vpop.f32.mrb[22].mxu0 }
 0x2d0   :  { %1493 = vst.msk [vmem:[%s2816_s4 + $0x38] sm:$0xff] %vm1485_vm5, %v1943_v15  ;;  %v1356_v61 = vpop.f32.mrb[23].mxu0 }
 0x2d1   :  { %1492 = vst.msk [vmem:[%s2816_s4 + $0x30] sm:$0xff] %vm1485_vm5, %v1356_v61 }
 0x2d3   :  { %v1946_v16 = vpop.f32.mrb[24].mxu0 }
 0x2d4   :  { %1495 = vst.msk [vmem:[%s2816_s4 + $0x48] sm:$0xff] %vm1485_vm5, %v1946_v16  ;;  %v1366_v6 = vpop.f32.mrb[25].mxu0 }
 0x2d5   :  { %1494 = vst.msk [vmem:[%s2816_s4 + $0x40] sm:$0xff] %vm1485_vm5, %v1366_v6 }
 0x2d7   :  { %v1949_v5 = vpop.f32.mrb[26].mxu0 }
 0x2d8   :  { %1497 = vst.msk [vmem:[%s2816_s4 + $0x58] sm:$0xff] %vm1485_vm5, %v1949_v5  ;;  %v1376_v19 = vpop.f32.mrb[27].mxu0 }
 0x2d9   :  { %1496 = vst.msk [vmem:[%s2816_s4 + $0x50] sm:$0xff] %vm1485_vm5, %v1376_v19 }
 0x2dd   :  { %v1952_v36 = vpop.f32.mrb[28].mxu0 }
 0x2de   :  { %1499 = vst.msk [vmem:[%s2816_s4 + $0x68] sm:$0xff] %vm1485_vm5, %v1952_v36  ;;  %v1386_v2 = vpop.f32.mrb[29].mxu0 }
 0x2df   :  { %1498 = vst.msk [vmem:[%s2816_s4 + $0x60] sm:$0xff] %vm1485_vm5, %v1386_v2 }
 0x2ec   :  { %v1955_v12 = vpop.f32.mrb[30].mxu0 }
 0x2ed   :  { %1501 = vst.msk [vmem:[%s2816_s4 + $0x78] sm:$0xff] %vm1485_vm5, %v1955_v12  ;;  %v1396_v34 = vpop.f32.mrb[31].mxu0 }
 0x2ee   :  { %1500 = vst.msk [vmem:[%s2816_s4 + $0x70] sm:$0xff] %vm1485_vm5, %v1396_v34 }
 0x2f0   :  { %v1958_v3 = vpop.f32.mrb[32].mxu0 }
 0x2f1   :  { %1503 = vst.msk [vmem:[%s2816_s4 + $0x88] sm:$0xff] %vm1485_vm5, %v1958_v3  ;;  %v1406_v9 = vpop.f32.mrb[33].mxu0 }
 0x2f2   :  { %1502 = vst.msk [vmem:[%s2816_s4 + $0x80] sm:$0xff] %vm1485_vm5, %v1406_v9 }
 0x2f4   :  { %v1961_v22 = vpop.f32.mrb[34].mxu0 }
 0x2f5   :  { %1505 = vst.msk [vmem:[%s2816_s4 + $0x98] sm:$0xff] %vm1485_vm5, %v1961_v22  ;;  %v1416_v23 = vpop.f32.mrb[35].mxu0 }
 0x2f6   :  { %1504 = vst.msk [vmem:[%s2816_s4 + $0x90] sm:$0xff] %vm1485_vm5, %v1416_v23 }
 0x2f8   :  { %v1964_v24 = vpop.f32.mrb[36].mxu0 }
 0x2f9   :  { %1507 = vst.msk [vmem:[%s2816_s4 + $0xa8] sm:$0xff] %vm1485_vm5, %v1964_v24  ;;  %v1426_v21 = vpop.f32.mrb[37].mxu0 }
 0x2fa   :  { %1506 = vst.msk [vmem:[%s2816_s4 + $0xa0] sm:$0xff] %vm1485_vm5, %v1426_v21 }
 0x2fc   :  { %v1967_v18 = vpop.f32.mrb[38].mxu0 }
 0x2fd   :  { %1509 = vst.msk [vmem:[%s2816_s4 + $0xb8] sm:$0xff] %vm1485_vm5, %v1967_v18  ;;  %v1436_v32 = vpop.f32.mrb[39].mxu0 }
 0x2fe   :  { %1508 = vst.msk [vmem:[%s2816_s4 + $0xb0] sm:$0xff] %vm1485_vm5, %v1436_v32 }
 0x300   :  { %v1970_v29 = vpop.f32.mrb[40].mxu0 }
 0x301   :  { %1511 = vst.msk [vmem:[%s2816_s4 + $0xc8] sm:$0xff] %vm1485_vm5, %v1970_v29  ;;  %v1446_v26 = vpop.f32.mrb[41].mxu0 }
 0x302   :  { %1510 = vst.msk [vmem:[%s2816_s4 + $0xc0] sm:$0xff] %vm1485_vm5, %v1446_v26 }
 0x304   :  { %v1973_v35 = vpop.f32.mrb[42].mxu0 }
 0x305   :  { %1513 = vst.msk [vmem:[%s2816_s4 + $0xd8] sm:$0xff] %vm1485_vm5, %v1973_v35  ;;  %v1456_v48 = vpop.f32.mrb[43].mxu0 }
 0x306   :  { %1512 = vst.msk [vmem:[%s2816_s4 + $0xd0] sm:$0xff] %vm1485_vm5, %v1456_v48 }
 0x308   :  { %v1976_v44 = vpop.f32.mrb[44].mxu0 }
 0x309   :  { %1515 = vst.msk [vmem:[%s2816_s4 + $0xe8] sm:$0xff] %vm1485_vm5, %v1976_v44  ;;  %v1466_v30 = vpop.f32.mrb[45].mxu0 }
 0x30a   :  { %1514 = vst.msk [vmem:[%s2816_s4 + $0xe0] sm:$0xff] %vm1485_vm5, %v1466_v30 }
 0x30c   :  { %v1979_v27 = vpop.f32.mrb[46].mxu0 }
 0x30d   :  { %1517 = vst.msk [vmem:[%s2816_s4 + $0xf8] sm:$0xff] %vm1485_vm5, %v1979_v27  ;;  %v1476_v31 = vpop.f32.mrb[47].mxu0 }
 0x30e   :  { %1516 = vst.msk [vmem:[%s2816_s4 + $0xf0] sm:$0xff] %vm1485_vm5, %v1476_v31 }

</bundles_post_ra>
